<compile_context>
chip_gen: v5e
topology: v5e:2x2
jax: 0.10.0
libtpu: 0.0.40
codegen_flags: <defaults>
</compile_context>

<pallas_src>
import functools

import jax
import jax.numpy as jnp
from jax.experimental import pallas as pl
from jax.experimental.pallas import tpu as pltpu


def _round_up(x, m):
    return (x + m - 1) // m * m


# ---------------------------------------------------------------------------
# Kernel 1: xw = seq @ W  (GCN feature transform), batched over unique seqs.
# ---------------------------------------------------------------------------
def _xw_kernel(seq_ref, w_ref, o_ref):
    o_ref[...] = jnp.dot(seq_ref[...], w_ref[...],
                         preferred_element_type=jnp.float32).astype(o_ref.dtype)


def _xw_matmul(seq_stack, w_p, *, tm):
    g, n, n_in_p = seq_stack.shape
    n_h_p = w_p.shape[1]
    return pl.pallas_call(
        _xw_kernel,
        out_shape=jax.ShapeDtypeStruct((g, n, n_h_p), seq_stack.dtype),
        grid_spec=pltpu.PrefetchScalarGridSpec(
            num_scalar_prefetch=0,
            grid=(g, n // tm),
            in_specs=[
                pl.BlockSpec((None, tm, n_in_p), lambda gi, i: (gi, i, 0)),
                pl.BlockSpec((n_in_p, n_h_p), lambda gi, i: (0, 0)),   # W resident
            ],
            out_specs=pl.BlockSpec((None, tm, n_h_p), lambda gi, i: (gi, i, 0)),
        ),
        compiler_params=pltpu.CompilerParams(
            dimension_semantics=("parallel", "parallel")),
    )(seq_stack, w_p)


# ---------------------------------------------------------------------------
# Kernel 2: h_group = PReLU(adj @ xw_cat + bias) * prompt, tiled reduction.
#           xw_cat holds the concatenated columns of all passes sharing `adj`.
# ---------------------------------------------------------------------------
def _gcn_agg_kernel(adj_ref, xw_ref, bias_ref, ppos_ref, pneg_ref,
                    o_ref, acc_ref, *, tk, resident_xw):
    k = pl.program_id(1)

    @pl.when(k == 0)
    def _init():
        acc_ref[...] = jnp.zeros_like(acc_ref)

    if resident_xw:
        start = pl.multiple_of(k * tk, tk)
        xw_blk = xw_ref[pl.ds(start, tk), :]
    else:
        xw_blk = xw_ref[...]
    acc_ref[...] += jnp.dot(adj_ref[...], xw_blk,
                            preferred_element_type=jnp.float32)

    @pl.when(k == pl.num_programs(1) - 1)
    def _finalize():
        z = acc_ref[...] + bias_ref[...]
        # PReLU(z) * prompt == z * (prompt if z > 0 else alpha * prompt)
        o_ref[...] = (z * jnp.where(z > 0.0, ppos_ref[...], pneg_ref[...])
                      ).astype(o_ref.dtype)


def _gcn_prompt(adj_m, xw_cat, bias_cat, ppos_cat, pneg_cat, *, tm, tk):
    n = adj_m.shape[0]
    w_cols = xw_cat.shape[1]
    isz = adj_m.dtype.itemsize
    xsz = xw_cat.dtype.itemsize

    # Keep xw VMEM-resident (constant block index -> DMA'd once) if it fits;
    # otherwise stream (tk, w_cols) blocks (re-read per row tile).
    resident_xw = 2 * n * w_cols * xsz <= (24 << 20)
    if resident_xw:
        xw_spec = pl.BlockSpec((n, w_cols), lambda i, k: (0, 0))
        xw_vmem = 2 * n * w_cols * xsz
        xw_reads = n * w_cols * xsz
    else:
        xw_spec = pl.BlockSpec((tk, w_cols), lambda i, k: (k, 0))
        xw_vmem = 2 * tk * w_cols * xsz
        xw_reads = (n // tm) * n * w_cols * xsz

    vmem_need = (2 * tm * tk * isz          # adj tiles (double-buffered)
                 + xw_vmem                  # xw
                 + tm * w_cols * 4          # fp32 accumulator scratch
                 + 2 * tm * w_cols * 4      # output tiles
                 + 6 * w_cols * 4           # bias / prompt rows
                 + (8 << 20))               # compiler scratch headroom
    vmem_limit = int(min(max(vmem_need, 32 << 20), 64 << 20))   # v7x-safe cap

    cost = pl.CostEstimate(
        flops=2 * n * n * w_cols,
        transcendentals=0,
        bytes_accessed=n * n * isz + xw_reads + n * w_cols * 4)

    kernel = functools.partial(_gcn_agg_kernel, tk=tk, resident_xw=resident_xw)
    return pl.pallas_call(
        kernel,
        out_shape=jax.ShapeDtypeStruct((n, w_cols), jnp.float32),
        grid_spec=pltpu.PrefetchScalarGridSpec(
            num_scalar_prefetch=0,
            grid=(n // tm, n // tk),
            in_specs=[
                pl.BlockSpec((tm, tk), lambda i, k: (i, k)),
                xw_spec,
                pl.BlockSpec((1, w_cols), lambda i, k: (0, 0)),
                pl.BlockSpec((1, w_cols), lambda i, k: (0, 0)),
                pl.BlockSpec((1, w_cols), lambda i, k: (0, 0)),
            ],
            out_specs=pl.BlockSpec((tm, w_cols), lambda i, k: (i, 0)),
            scratch_shapes=[pltpu.VMEM((tm, w_cols), jnp.float32)],
        ),
        compiler_params=pltpu.CompilerParams(
            dimension_semantics=("parallel", "arbitrary"),
            vmem_limit_bytes=vmem_limit),
        cost_estimate=cost,
    )(adj_m, xw_cat, bias_cat, ppos_cat, pneg_cat)


# ---------------------------------------------------------------------------
# Kernel 3: c = sigmoid(mean over nodes) for h_11 and h_33, fused in one call.
# ---------------------------------------------------------------------------
def _readout2_kernel(h1_ref, h3_ref, o_ref, acc_ref, *, inv_n):
    i = pl.program_id(0)

    @pl.when(i == 0)
    def _init():
        acc_ref[...] = jnp.zeros_like(acc_ref)

    s1 = jnp.sum(h1_ref[...], axis=0, keepdims=True)
    s3 = jnp.sum(h3_ref[...], axis=0, keepdims=True)
    acc_ref[...] += jnp.concatenate([s1, s3], axis=0)

    @pl.when(i == pl.num_programs(0) - 1)
    def _finalize():
        m = acc_ref[...] * inv_n
        o_ref[...] = (1.0 / (1.0 + jnp.exp(-m))).astype(o_ref.dtype)


def _readout_sigmoid2(h1_arr, h1_col, h3_arr, h3_col, *, n, n_h_p, tm):
    return pl.pallas_call(
        functools.partial(_readout2_kernel, inv_n=1.0 / n),
        out_shape=jax.ShapeDtypeStruct((2, n_h_p), jnp.float32),
        grid_spec=pltpu.PrefetchScalarGridSpec(
            num_scalar_prefetch=0,
            grid=(n // tm,),
            in_specs=[
                pl.BlockSpec((tm, n_h_p), lambda i, c=h1_col: (i, c)),
                pl.BlockSpec((tm, n_h_p), lambda i, c=h3_col: (i, c)),
            ],
            out_specs=pl.BlockSpec((2, n_h_p), lambda i: (0, 0)),
            scratch_shapes=[pltpu.VMEM((2, n_h_p), jnp.float32)],
        ),
        compiler_params=pltpu.CompilerParams(
            dimension_semantics=("arbitrary",)),
    )(h1_arr, h3_arr)


# ---------------------------------------------------------------------------
# Kernel 4: bilinear discriminator with hoisted context vector u:
#   row 0: sc_1 = h_00 @ u^T,  row 1: sc_2 = h_22 @ u^T   (lane-dense (2, N) output)
# ---------------------------------------------------------------------------
def _disc_kernel(h00_ref, h22_ref, u_ref, o_ref):
    u = u_ref[...]                                               # (1, n_h_p)
    dims = (((1,), (1,)), ((), ()))                              # contract hidden lanes
    sc1 = jax.lax.dot_general(u, h00_ref[...], dims,
                              preferred_element_type=jnp.float32)   # (1, tm)
    sc2 = jax.lax.dot_general(u, h22_ref[...], dims,
                              preferred_element_type=jnp.float32)
    o_ref[...] = jnp.concatenate([sc1, sc2], axis=0).astype(o_ref.dtype)


def _discriminator(h00_arr, h00_col, h22_arr, h22_col, u, *, n, n_h_p, tm):
    return pl.pallas_call(
        _disc_kernel,
        out_shape=jax.ShapeDtypeStruct((2, n), jnp.float32),
        grid_spec=pltpu.PrefetchScalarGridSpec(
            num_scalar_prefetch=0,
            grid=(n // tm,),
            in_specs=[
                pl.BlockSpec((tm, n_h_p), lambda i, c=h00_col: (i, c)),
                pl.BlockSpec((tm, n_h_p), lambda i, c=h22_col: (i, c)),
                pl.BlockSpec((1, n_h_p), lambda i: (0, 0)),
            ],
            out_specs=pl.BlockSpec((2, tm), lambda i: (0, i)),
        ),
        compiler_params=pltpu.CompilerParams(
            dimension_semantics=("parallel",)),
    )(h00_arr, h22_arr, u)


# ---------------------------------------------------------------------------
# GraphCL.forward
# ---------------------------------------------------------------------------
def graphcl_forward(gcn_params, prompt, disc_params,
                    seq1, seq2, seq3, seq4,
                    adj, aug_adj1, aug_adj2,
                    msk=None, samp_bias1=None, samp_bias2=None,
                    aug_type="node", *, tm=512, tk=512,
                    compute_dtype=jnp.bfloat16):
    """GraphCL.forward with the MultiGPrompt/DGI dense GCN as the injected `gcn`.

    gcn_params  = (W (n_in, n_h), bias (1, n_h), alpha (1,))     # PReLU slope
    disc_params = (Wb (n_h, n_h), bb (1,))                       # nn.Bilinear(n_h, n_h, 1)
    seq*: (N, n_in) node features; adj / aug_adj*: (N, N) dense normalized adjacency.
    Returns logits of shape (1, 2N), float32.
    """
    # TODO(synk): masked AvgReadout (sum(h*msk)/sum(msk)) and the sparse-adjacency
    # path of the injected gcn are not implemented; demo uses msk=None / dense adj.
    if msk is not None:
        raise NotImplementedError("masked readout not implemented")

    w, bias, alpha = gcn_params
    wb, bb = disc_params
    n, n_in = seq1.shape
    n_h = w.shape[1]

    tm = min(tm, n)
    tk = min(tk, n)
    assert n % tm == 0 and n % tk == 0, "node count must divide the tile sizes"

    n_in_p = _round_up(n_in, 128)        # lane-dense feature / hidden dims
    n_h_p = _round_up(n_h, 128)

    def pad2(x, r, c):
        x = jnp.asarray(x, jnp.float32)
        return jnp.pad(x, ((0, r - x.shape[0]), (0, c - x.shape[1])))

    # Exact zero padding is load-bearing (padded lanes of h_* and u stay 0).
    w_p = pad2(w, n_in_p, n_h_p).astype(compute_dtype)
    bias_p = pad2(bias, 1, n_h_p)
    prompt_p = pad2(prompt, 1, n_h_p)
    alpha_s = jnp.asarray(alpha, jnp.float32).reshape(-1)[0]
    prompt_neg = alpha_s * prompt_p      # PReLU slope folded into the prompt row
    wbt_p = pad2(wb, n_h_p, n_h_p).T     # Wb^T, padded rows/cols identically zero
    bb_s = jnp.asarray(bb, jnp.float32).reshape(-1)[0]

    # Pass order: 0 -> h_00, 1 -> h_11, 2 -> h_33, 3 -> h_22.
    seq_list = [seq1, seq2, seq3, seq4]
    adj_list = [adj, aug_adj1, aug_adj2]
    if aug_type == "edge":
        pass_seq, pass_adj = [0, 0, 0, 1], [0, 1, 2, 0]
    elif aug_type == "mask":
        pass_seq, pass_adj = [0, 2, 3, 1], [0, 0, 0, 0]
    elif aug_type in ("node", "subgraph"):
        pass_seq, pass_adj = [0, 2, 3, 1], [0, 1, 2, 0]
    else:
        raise ValueError(f"unknown aug_type {aug_type!r}")

    # Deduplicate feature matrices (seq1 shows up 3x for the 'edge' aug).
    used = sorted(set(pass_seq))
    seq_pos = {s: i for i, s in enumerate(used)}
    seq_stack = jnp.stack([pad2(seq_list[s], n, n_in_p) for s in used]
                          ).astype(compute_dtype)
    xw = _xw_matmul(seq_stack, w_p, tm=tm)                  # (n_unique, N, n_h_p)

    # Group the GCN passes by adjacency: each adjacency streamed from HBM once,
    # shared-adj passes computed in one matmul with concatenated output columns.
    groups = {}
    for p, a in enumerate(pass_adj):
        groups.setdefault(a, []).append(p)

    view = {}                                               # pass -> (array, col block)
    for a, passes in groups.items():
        g = len(passes)
        xw_cat = jnp.concatenate([xw[seq_pos[pass_seq[p]]] for p in passes], axis=1)
        bias_cat = jnp.concatenate([bias_p] * g, axis=1)
        ppos_cat = jnp.concatenate([prompt_p] * g, axis=1)
        pneg_cat = jnp.concatenate([prompt_neg] * g, axis=1)
        adj_c = jnp.asarray(adj_list[a]).astype(compute_dtype)
        out = _gcn_prompt(adj_c, xw_cat, bias_cat, ppos_cat, pneg_cat, tm=tm, tk=tk)
        for j, p in enumerate(passes):
            view[p] = (out, j)

    # c_1, c_3 = sigmoid(mean_nodes(h_11 / h_33)) in one fused kernel.
    c = _readout_sigmoid2(view[1][0], view[1][1], view[2][0], view[2][1],
                          n=n, n_h_p=n_h_p, tm=tm)          # (2, n_h_p)

    # Hoisted bilinear context vector: u_j = sum_k Wb[j, k] * (c_1 + c_3)_k  (tiny matvec).
    u = (c[0:1, :] + c[1:2, :]) @ wbt_p                     # (1, n_h_p), fp32

    sc = _discriminator(view[0][0], view[0][1], view[3][0], view[3][1], u,
                        n=n, n_h_p=n_h_p, tm=tm)            # (2, N): [sc_1 ; sc_2]
    sc = sc + 2.0 * bb_s                                    # bilinear bias (ret1 + ret2)
    if samp_bias1 is not None:                              # added once in ret1, once in ret2
        sc = sc.at[0, :].add(2.0 * jnp.reshape(samp_bias1, (-1,)))
    if samp_bias2 is not None:
        sc = sc.at[1, :].add(2.0 * jnp.reshape(samp_bias2, (-1,)))
    return sc.reshape(1, 2 * n)                             # == cat(sc_1, sc_2)


# ---------------------------------------------------------------------------
# Demo / correctness check
# ---------------------------------------------------------------------------
def _xavier_uniform(key, shape):
    fan_in, fan_out = shape[-2], shape[-1]
    bound = (6.0 / (fan_in + fan_out)) ** 0.5
    return jax.random.uniform(key, shape, jnp.float32, -bound, bound)


def _make_adj(key, n):
    a_raw = (jax.random.uniform(key, (n, n)) > 0.9).astype(jnp.float32)
    a_sym = jnp.maximum(a_raw, a_raw.T) + jnp.eye(n, dtype=jnp.float32)
    deg = jnp.sum(a_sym, axis=1, keepdims=True)
    return a_sym / deg


if __name__ == "__main__":
    key = jax.random.PRNGKey(0)
    (k_s1, k_s2, k_s3, k_s4, k_a, k_a1, k_a2,
     k_prompt, k_w, k_wb) = jax.random.split(key, 10)

    N, n_in, n_h = 256, 64, 32          # small shapes; feature dims lane-padded to 128 inside

    seq1 = jax.random.normal(k_s1, (N, n_in), jnp.float32)
    seq2 = jax.random.normal(k_s2, (N, n_in), jnp.float32)   # shuffled / negative features
    seq3 = jax.random.normal(k_s3, (N, n_in), jnp.float32)   # augmented view 1
    seq4 = jax.random.normal(k_s4, (N, n_in), jnp.float32)   # augmented view 2

    adj = _make_adj(k_a, N)
    aug_adj1 = _make_adj(k_a1, N)
    aug_adj2 = _make_adj(k_a2, N)

    # parameters (deterministic init per the module __init__s)
    prompt = _xavier_uniform(k_prompt, (1, n_h))             # nn.Parameter(1, n_h), xavier
    w = _xavier_uniform(k_w, (n_in, n_h))                    # GCN fc weight (bias=False)
    gcn_bias = jnp.zeros((1, n_h), jnp.float32)              # GCN additive bias
    alpha = jnp.full((1,), 0.25, jnp.float32)                # PReLU default slope
    wb = _xavier_uniform(k_wb, (n_h, n_h))                   # Bilinear weight (squeezed)
    bb = jnp.zeros((1,), jnp.float32)                        # Bilinear bias -> 0

    # plain-JAX reference of GraphCL.forward (true fp32 matmuls)
    with jax.default_matmul_precision("highest"):
        def gcn_ref(s, a):
            z = a @ (s @ w) + gcn_bias
            return jnp.where(z > 0, z, alpha[0] * z)

        def graphcl_ref(aug):
            h_00 = gcn_ref(seq1, adj) * prompt
            if aug == "edge":
                h_1, h_3 = gcn_ref(seq1, aug_adj1), gcn_ref(seq1, aug_adj2)
            elif aug == "mask":
                h_1, h_3 = gcn_ref(seq3, adj), gcn_ref(seq4, adj)
            else:
                h_1, h_3 = gcn_ref(seq3, aug_adj1), gcn_ref(seq4, aug_adj2)
            h_11, h_33 = h_1 * prompt, h_3 * prompt
            h_22 = gcn_ref(seq2, adj) * prompt
            c_1 = jax.nn.sigmoid(jnp.mean(h_11, axis=0))
            c_3 = jax.nn.sigmoid(jnp.mean(h_33, axis=0))

            def bil(hx, cv):
                return hx @ wb @ cv + bb[0]

            ret1 = jnp.concatenate([bil(h_00, c_1), bil(h_22, c_1)])
            ret2 = jnp.concatenate([bil(h_00, c_3), bil(h_22, c_3)])
            return (ret1 + ret2).reshape(1, 2 * N)

        ref_node = graphcl_ref("node")
        ref_edge = graphcl_ref("edge")

    params = ((w, gcn_bias, alpha), prompt, (wb, bb))

    # fp32 kernel path: tight check against the reference.
    out_f32 = graphcl_forward(*params, seq1, seq2, seq3, seq4,
                              adj, aug_adj1, aug_adj2,
                              aug_type="node", compute_dtype=jnp.float32)
    jax.block_until_ready(out_f32)
    assert out_f32.shape == (1, 2 * N)
    assert jnp.allclose(out_f32, ref_node, atol=1e-3, rtol=1e-3), \
        float(jnp.max(jnp.abs(out_f32 - ref_node)))

    # bf16 default path (bf16 adj/seq/xw, fp32 accumulation): loose-tolerance check.
    out_bf16 = graphcl_forward(*params, seq1, seq2, seq3, seq4,
                               adj, aug_adj1, aug_adj2, aug_type="node")
    jax.block_until_ready(out_bf16)
    assert out_bf16.shape == (1, 2 * N)
    assert bool(jnp.all(jnp.isfinite(out_bf16)))
    assert jnp.allclose(out_bf16, ref_node, atol=1e-1, rtol=1e-1), \
        float(jnp.max(jnp.abs(out_bf16 - ref_node)))

    # 'edge' aug exercises the seq dedup path (seq1 used for 3 of the 4 passes).
    out_edge = graphcl_forward(*params, seq1, seq2, seq3, seq4,
                               adj, aug_adj1, aug_adj2, aug_type="edge")
    jax.block_until_ready(out_edge)
    assert out_edge.shape == (1, 2 * N)
    assert jnp.allclose(out_edge, ref_edge, atol=1e-1, rtol=1e-1), \
        float(jnp.max(jnp.abs(out_edge - ref_edge)))

    print("KERNEL_OK")
</pallas_src>

<mosaic_0001>
module attributes {stable_mosaic.version = 11 : i64} {
  func.func @_xw_kernel(%arg0: i32, %arg1: i32, %arg2: memref<1x256x128xf32, #tpu.memory_space<vmem>>, %arg3: memref<128x128xf32, #tpu.memory_space<vmem>>, %arg4: memref<1x256x128xf32, #tpu.memory_space<vmem>>) attributes {dimension_semantics = [#tpu.dimension_semantics<parallel>, #tpu.dimension_semantics<parallel>], iteration_bounds = array<i64: 4, 1>, scalar_prefetch = 0 : i64, scratch_operands = 0 : i64, tpu.core_type = #tpu.core_type<tc>, window_params = [{transform_indices = @transform_0, window_bounds = array<i64: 1, 256, 128>}, {pipeline_mode = #tpu.pipeline_mode<synchronous>, transform_indices = @transform_1, window_bounds = array<i64: 128, 128>}, {transform_indices = @transform_2, window_bounds = array<i64: 1, 256, 128>}]} {
    %c0 = arith.constant 0 : index
    %c0_0 = arith.constant 0 : index
    %c0_1 = arith.constant 0 : index
    %0 = vector.load %arg2[%c0, %c0_0, %c0_1] : memref<1x256x128xf32, #tpu.memory_space<vmem>>, vector<1x256x128xf32>
    %1 = vector.shape_cast %0 : vector<1x256x128xf32> to vector<256x128xf32>
    %c0_2 = arith.constant 0 : index
    %c0_3 = arith.constant 0 : index
    %2 = vector.load %arg3[%c0_2, %c0_3] : memref<128x128xf32, #tpu.memory_space<vmem>>, vector<128x128xf32>
    %cst = arith.constant dense<0.000000e+00> : vector<256x128xf32>
    %3 = tpu.matmul %1, %2, %cst {dimension_numbers = #tpu.dot_dimension_numbers<[1], [0], [0], [1], [0, 0, 1, 1], [], []>} : vector<256x128xf32>, vector<128x128xf32>, vector<256x128xf32> -> vector<256x128xf32>
    %c0_4 = arith.constant 0 : index
    %c0_5 = arith.constant 0 : index
    %c0_6 = arith.constant 0 : index
    %4 = vector.load %arg4[%c0_4, %c0_5, %c0_6] : memref<1x256x128xf32, #tpu.memory_space<vmem>>, vector<1x256x128xf32>
    %5 = vector.shape_cast %4 : vector<1x256x128xf32> to vector<256x128xf32>
    %6 = vector.shape_cast %3 : vector<256x128xf32> to vector<1x256x128xf32>
    tpu.vector_store %arg4[%c0_4, %c0_5, %c0_6], %6 {strides = array<i32>} : memref<1x256x128xf32, #tpu.memory_space<vmem>>, vector<1x256x128xf32>,
    return
  }
  func.func @transform_0(%arg0: i32, %arg1: i32) -> (i32, i32, i32) {
    %c0_i32 = arith.constant 0 : i32
    %c0_i32_0 = arith.constant 0 : i32
    return %arg0, %arg1, %c0_i32 : i32, i32, i32
  }
  func.func @transform_1(%arg0: i32, %arg1: i32) -> (i32, i32) {
    %c0_i32 = arith.constant 0 : i32
    %c0_i32_0 = arith.constant 0 : i32
    %c0_i32_1 = arith.constant 0 : i32
    return %c0_i32, %c0_i32_0 : i32, i32
  }
  func.func @transform_2(%arg0: i32, %arg1: i32) -> (i32, i32, i32) {
    %c0_i32 = arith.constant 0 : i32
    %c0_i32_0 = arith.constant 0 : i32
    return %arg0, %arg1, %c0_i32 : i32, i32, i32
  }
}

</mosaic_0001>

<bundles_post_ra>
// kernel: tpu_custom_call.1
= control target key start
LH: loop header
LB: loop body
LE: loop exit
PB: predicated region body
PF: predicated region fallthrough
CT: control target
= control target key end

     0   :  { %7 = vsyncpa [#allocation3], 0  ;;  %s1047_s0 = inlined_call_operand.hbm [shape: f32[4,256,128], index: 0, kind: input, shape index: {}]   ;;  %s1048_s1 = inlined_call_operand.hbm [shape: f32[128,128], index: 1, kind: input, shape index: {}]   ;;  %s1049_s2 = inlined_call_operand.hbm [shape: f32[4,256,128], index: 2, kind: output, shape index: {}]  }
   0x1   :  { %9 = vsyncpa [#allocation3 + $0x1], 0 }
   0x2   :  { %10 = vsyncpa [#allocation6], 0 }
   0x3   :  { %11 = vsyncpa [#allocation4], 0 }
   0x4   :  { %13 = vsyncpa [#allocation4 + $0x1], 0  ;;  %s821_s9 = smov 0   ;;  %s823_s10 = smov 0  }
   0x5   :  { %s825_s11 = smov 0   ;;  %s827_s12 = smov 0  }
   0x6   :  { %s829_s13 = smov 0   ;;  %s831_s14 = smov 0  }
   0x7 LB: > { %s509_s15 = sadd.s32 4294967295, %s799_s14   ;;  %s510_s16 = sadd.s32 4294967294, %s799_s14   ;;  %s799_s14 = sphi %s831_s14, %s19_s14   ;;  %s795_s13 = sphi %s829_s13, %s1061_s13   ;;  %s791_s12 = sphi %s827_s12, %s1060_s12   ;;  %s787_s11 = sphi %s825_s11, %s1059_s11   ;;  %s783_s10 = sphi %s823_s10, %s1058_s10   ;;  %s779_s9 = sphi %s821_s9, %s1057_s9  }
   0x8   : > { %p53_p0 = scmp.ne.s32.totalorder %s783_s10, %s779_s9  ;;  %p855_p1 = scmp.eq.s32.totalorder %s509_s15, 0 }
   0x9   : > { %p859_p2 = scmp.eq.s32.totalorder %s509_s15, 3  ;;  %p106_p3 = scmp.eq.s32.totalorder %s510_s16, 3 }
   0xa   : > { %p865_p4 = por %p855_p1, %p53_p0  ;;  %p511_p5 = scmp.ge.s32.totalorder %s799_s14, 1 }
   0xb   : > { %p870_p6 = por %p106_p3, %p53_p0  ;;  %p113_p7 = scmp.lt.s32.totalorder %s799_s14, 5 }
   0xc   : > { %s124_s23 = sshll.u32 %s1048_s1, 4  ;;  %s801_s25 = smov [#allocation5]   ;;  %s125_s23 = int_to_ptr.hbm [resolvable:$true] %s124_s23 }
   0xd   : > { %p878_p8 = pnand %p511_p5, %p113_p7  ;;  %s126_s26 = sshll.u32 %s801_s25, 4  ;;  %s127_s26 = int_to_ptr.vmem [resolvable:$true] %s126_s26 }
   0xe   : > { %s802_s27 = smov 128   ;;  %s803_s28 = smov 8  }
   0xf   : > { %p584_p9 = pneg %p878_p8  ;;  %s31_s29 = sadd.s32 1, %s795_s13 }
  0x10   : > { %p33_p11 = scmp.ge.s32.totalorder %s31_s29, 4  ;;  %s40_s30 = sadd.s32 1, %s787_s11 }
  0x11   : > { %p585_p10 = pnand %p584_p9, %p855_p1  ;;  %p47_p12 = scmp.ne.s32.totalorder %s787_s11, %s783_s10 }
  0x12   : > { %p48_p13 = scmp.eq.s32.totalorder %s799_s14, 0  ;;  %s1063_s29 = smov (%p33_p11, %s31_s29), 0 }
  0x13   : > { %587 = dma.hbm_to_vmem [thread:$0]  (!%p585_p10), %s125_s23, 2048, %s127_s26, [#allocation6], %s802_s27, %s802_s27, %s803_s28  }
  0x14   : > { %p896_p0 = por %p48_p13, %p47_p12  ;;  %p902_p3 = por %p859_p2, %p47_p12 }
  0x15   : > { %s35_s5 = ssub.s32 %s795_s13, %s1063_s29  ;;  %p597_p5 = scmp.lt.s32.totalorder %s799_s14, 4 }
  0x16   : > { %p38_p7 = scmp.eq.s32.totalorder %s35_s5, 0  ;;  %s140_s6 = sand.u32 1, %s787_s11  }
  0x17   : > { %s514_s7 = sshll.u32 %s140_s6, 8  ;;  %s526_s15 = sshll.u32 %s795_s13, 8 }
  0x18   : > { %s911_s8 = scalar_select %p38_p7, %s787_s11, %s40_s30  }
  0x19   : > { %s151_s22 = scalar_lea.hbm %s1047_s0, %s526_s15  ;;  %s144_s23 = scalar_lea.vmem [#allocation2], %s514_s7 }
  0x1a   : > { %s154_s25 = sshll.u32 %s144_s23, 4  ;;  %s152_s18 = sshll.u32 %s151_s22, 4  ;;  %s155_s25 = int_to_ptr.vmem [resolvable:$true] %s154_s25  ;;  %s153_s18 = int_to_ptr.hbm [resolvable:$true] %s152_s18 }
  0x1b   : > { %p589_p2 = pnand %p597_p5, %p896_p0  ;;  %s141_s26 = scalar_lea.sflag [#allocation3], %s140_s6 }
  0x1c   : > { %166 = sbr.rel (%p878_p8) target bundleno = 261 (0x105), region = 28  ;;  %s925_s30 = sand.u32 (!%p878_p8), 1, %s783_s10  }
  0x1d   : > { %591 = dma.hbm_to_vmem [thread:$0]  (!%p589_p2), %s153_s18, 4096, %s155_s25, %s141_s26, %s802_s27, %s802_s27, %s803_s28  }
  0x1e   : > { %s518_s5 = sshll.u32 (!%p878_p8), %s925_s30, 8  ;;  %s169_s7 = scalar_lea.sflag (!%p878_p8), [#allocation3], %s925_s30 }
  0x1f   : > { %s931_s3 = scalar_lea.vmem (!%p878_p8), [#allocation2], %s518_s5 }
  0x21   : > { %766 = dma.done.wait (%p865_p4), %s169_s7, 4096  }
  0x22   : > { %768 = vsyncadd (%p865_p4), %s169_s7, 4294963200 }
  0x23   : > { %770 = dma.done.wait (%p855_p1), [#allocation6], 2048  }
  0x24   : > { %772 = vsyncadd (%p855_p1), [#allocation6], 4294965248  ;;  %v248_v0 = vld [vmem:[#allocation5 + $0x78] sm:$0xff]  ;;  %v247_v1 = vld [vmem:[#allocation5 + $0x70] sm:$0xff]  ;;  %s975_s17 = scalar_lea.vmem [#allocation7], %s518_s5  ;;  %s527_s19 = sshll.u32 %s791_s12, 8 }
  0x25   : > { %529 = vmatpush.msra.mxu2 %v248_v0  ;;  %530 = vmatpush.msra.mxu3 %v248_v0  ;;  %v246_v2 = vld [vmem:[#allocation5 + $0x68] sm:$0xff]  ;;  %v245_v3 = vld [vmem:[#allocation5 + $0x60] sm:$0xff]  ;;  %v244_v4 = vld [vmem:[#allocation5 + $0x58] sm:$0xff]  ;;  %s408_s28 = scalar_lea.hbm %s1049_s2, %s527_s19  ;;  %s409_s6 = sshll.u32 %s975_s17, 4  ;;  %s410_s6 = int_to_ptr.vmem [resolvable:$true] %s409_s6 }
  0x26   : > { %249 = vmatpush.msra.mxu0 %v248_v0  ;;  %528 = vmatpush.msra.mxu1 %v248_v0  ;;  %v243_v5 = vld [vmem:[#allocation5 + $0x50] sm:$0xff]  ;;  %v242_v6 = vld [vmem:[#allocation5 + $0x48] sm:$0xff]  ;;  %v241_v7 = vld [vmem:[#allocation5 + $0x40] sm:$0xff]  ;;  %s411_s15 = sshll.u32 %s408_s28, 4  ;;  %s395_s12 = scalar_lea.sflag [#allocation4], %s925_s30  ;;  %s412_s15 = int_to_ptr.hbm [resolvable:$true] %s411_s15 }
  0x27   : > { %532 = vmatpush.msra.mxu2 %v247_v1  ;;  %533 = vmatpush.msra.mxu3 %v247_v1  ;;  %v240_v8 = vld [vmem:[#allocation5 + $0x38] sm:$0xff]  ;;  %v239_v9 = vld [vmem:[#allocation5 + $0x30] sm:$0xff]  ;;  %v238_v10 = vld [vmem:[#allocation5 + $0x28] sm:$0xff]  ;;  %s727_s16 = sshra.s32 %s412_s15, 4  ;;  %s733_s25 = scalar_lea.hbm %s1049_s2, 1024  ;;  %s728_s16 = int_to_ptr.hbm [resolvable:$true] %s727_s16 }
  0x28   : > { %250 = vmatpush.msra.mxu0 %v247_v1  ;;  %531 = vmatpush.msra.mxu1 %v247_v1  ;;  %v237_v11 = vld [vmem:[#allocation5 + $0x20] sm:$0xff]  ;;  %v236_v12 = vld [vmem:[#allocation5 + $0x18] sm:$0xff]  ;;  %v235_v13 = vld [vmem:[#allocation5 + $0x10] sm:$0xff]  ;;  %s729_s21 = scalar_lea.hbm %s728_s16, 256  ;;  %p734_p9 = scmp.lt.s32.totalorder %s728_s16, %s1049_s2 }
  0x29   : > { %535 = vmatpush.msra.mxu2 %v246_v2  ;;  %536 = vmatpush.msra.mxu3 %v246_v2  ;;  %v234_v14 = vld [vmem:[#allocation5 + $0x8] sm:$0xff]  ;;  %v233_v15 = vld [vmem:[#allocation5] sm:$0xff]  ;;  %v219_v24 = vld [vmem:[%s931_s3 + $0x90] sm:$0xff]  ;;  %p730_p1 = scmp.ne.s32.totalorder %s728_s16, %s729_s21  ;;  %p735_p10 = scmp.lt.s32.totalorder %s733_s25, %s729_s21 }
  0x2a   : > { %251 = vmatpush.msra.mxu0 %v246_v2  ;;  %534 = vmatpush.msra.mxu1 %v246_v2  ;;  %v217_v16 = vld [vmem:[%s931_s3 + $0x80] sm:$0xff]  ;;  %v218_v20 = vld [vmem:[%s931_s3 + $0x88] sm:$0xff]  ;;  %v227_v25 = vld [vmem:[%s931_s3 + $0xd0] sm:$0xff] }
  0x2b   : > { %538 = vmatpush.msra.mxu2 %v245_v3  ;;  %539 = vmatpush.msra.mxu3 %v245_v3  ;;  %v225_v17 = vld [vmem:[%s931_s3 + $0xc0] sm:$0xff]  ;;  %v226_v21 = vld [vmem:[%s931_s3 + $0xc8] sm:$0xff]  ;;  %v203_v26 = vld [vmem:[%s931_s3 + $0x10] sm:$0xff]  ;;  %p731_p4 = pnand %p730_p1, %p902_p3  ;;  %p736_p11 = por %p735_p10, %p734_p9 }
  0x2c   : > { %252 = vmatpush.msra.mxu0 %v245_v3  ;;  %537 = vmatpush.msra.mxu1 %v245_v3  ;;  %v201_v18 = vld [vmem:[%s931_s3] sm:$0xff]  ;;  %v202_v22 = vld [vmem:[%s931_s3 + $0x8] sm:$0xff]  ;;  %v211_v27 = vld [vmem:[%s931_s3 + $0x50] sm:$0xff] }
  0x2d   : > { %541 = vmatpush.msra.mxu2 %v244_v4  ;;  %542 = vmatpush.msra.mxu3 %v244_v4  ;;  %v209_v19 = vld [vmem:[%s931_s3 + $0x40] sm:$0xff]  ;;  %v210_v23 = vld [vmem:[%s931_s3 + $0x48] sm:$0xff]  ;;  %v220_v28 = vld [vmem:[%s931_s3 + $0x98] sm:$0xff]  ;;  %p732_p8 = pneg %p731_p4 }
  0x2e   : > { %253 = vmatpush.msra.mxu0 %v244_v4  ;;  %540 = vmatpush.msra.mxu1 %v244_v4  ;;  %v228_v29 = vld [vmem:[%s931_s3 + $0xd8] sm:$0xff]  ;;  %v221_v32 = vld [vmem:[%s931_s3 + $0xa0] sm:$0xff]  ;;  %v222_v36 = vld [vmem:[%s931_s3 + $0xa8] sm:$0xff] }
  0x2f   : > { %544 = vmatpush.msra.mxu2 %v243_v5  ;;  %545 = vmatpush.msra.mxu3 %v243_v5  ;;  %v204_v30 = vld [vmem:[%s931_s3 + $0x18] sm:$0xff]  ;;  %v229_v33 = vld [vmem:[%s931_s3 + $0xe0] sm:$0xff]  ;;  %v230_v37 = vld [vmem:[%s931_s3 + $0xe8] sm:$0xff]  ;;  %p737_p12 = pnand %p736_p11, %p732_p8 }
  0x30   : > { %254 = vmatpush.msra.mxu0 %v243_v5  ;;  %543 = vmatpush.msra.mxu1 %v243_v5  ;;  %v212_v31 = vld [vmem:[%s931_s3 + $0x58] sm:$0xff]  ;;  %v205_v34 = vld [vmem:[%s931_s3 + $0x20] sm:$0xff]  ;;  %v206_v38 = vld [vmem:[%s931_s3 + $0x28] sm:$0xff] }
  0x31   : > { %547 = vmatpush.msra.mxu2 %v242_v6  ;;  %548 = vmatpush.msra.mxu3 %v242_v6  ;;  %v213_v35 = vld [vmem:[%s931_s3 + $0x60] sm:$0xff]  ;;  %v214_v39 = vld [vmem:[%s931_s3 + $0x68] sm:$0xff]  ;;  %v223_v40 = vld [vmem:[%s931_s3 + $0xb0] sm:$0xff] }
  0x32   : > { %255 = vmatpush.msra.mxu0 %v242_v6  ;;  %546 = vmatpush.msra.mxu1 %v242_v6  ;;  %v231_v41 = vld [vmem:[%s931_s3 + $0xf0] sm:$0xff]  ;;  %v224_v44 = vld [vmem:[%s931_s3 + $0xb8] sm:$0xff] }
  0x33   : > { %550 = vmatpush.msra.mxu2 %v241_v7  ;;  %551 = vmatpush.msra.mxu3 %v241_v7  ;;  %v207_v42 = vld [vmem:[%s931_s3 + $0x30] sm:$0xff]  ;;  %v232_v45 = vld [vmem:[%s931_s3 + $0xf8] sm:$0xff] }
  0x34   : > { %256 = vmatpush.msra.mxu0 %v241_v7  ;;  %549 = vmatpush.msra.mxu1 %v241_v7  ;;  %v215_v43 = vld [vmem:[%s931_s3 + $0x70] sm:$0xff]  ;;  %v208_v46 = vld [vmem:[%s931_s3 + $0x38] sm:$0xff] }
  0x35   : > { %553 = vmatpush.msra.mxu2 %v240_v8  ;;  %554 = vmatpush.msra.mxu3 %v240_v8  ;;  %v216_v47 = vld [vmem:[%s931_s3 + $0x78] sm:$0xff] }
  0x36   : > { %257 = vmatpush.msra.mxu0 %v240_v8  ;;  %552 = vmatpush.msra.mxu1 %v240_v8 }
  0x37   : > { %556 = vmatpush.msra.mxu2 %v239_v9  ;;  %557 = vmatpush.msra.mxu3 %v239_v9 }
  0x38   : > { %258 = vmatpush.msra.mxu0 %v239_v9  ;;  %555 = vmatpush.msra.mxu1 %v239_v9 }
  0x39   : > { %559 = vmatpush.msra.mxu2 %v238_v10  ;;  %560 = vmatpush.msra.mxu3 %v238_v10 }
  0x3a   : > { %259 = vmatpush.msra.mxu0 %v238_v10  ;;  %558 = vmatpush.msra.mxu1 %v238_v10 }
  0x3b   : > { %562 = vmatpush.msra.mxu2 %v237_v11  ;;  %563 = vmatpush.msra.mxu3 %v237_v11 }
  0x3c   : > { %260 = vmatpush.msra.mxu0 %v237_v11  ;;  %561 = vmatpush.msra.mxu1 %v237_v11 }
  0x3d   : > { %565 = vmatpush.msra.mxu2 %v236_v12  ;;  %566 = vmatpush.msra.mxu3 %v236_v12 }
  0x3e   : > { %261 = vmatpush.msra.mxu0 %v236_v12  ;;  %564 = vmatpush.msra.mxu1 %v236_v12 }
  0x3f   : > { %568 = vmatpush.msra.mxu2 %v235_v13  ;;  %569 = vmatpush.msra.mxu3 %v235_v13 }
  0x40   : > { %262 = vmatpush.msra.mxu0 %v235_v13  ;;  %567 = vmatpush.msra.mxu1 %v235_v13 }
  0x41   : > { %571 = vmatpush.msra.mxu2 %v234_v14  ;;  %572 = vmatpush.msra.mxu3 %v234_v14 }
  0x42   : > { %263 = vmatpush.msra.mxu0 %v234_v14  ;;  %570 = vmatpush.msra.mxu1 %v234_v14 }
  0x43   : > { %574 = vmatpush.msra.mxu2 %v233_v15  ;;  %575 = vmatpush.msra.mxu3 %v233_v15 }
  0x44   : > { %313 = vmatmul.f32.vlgmr.msra.gmra.mxu2 %v217_v16  ;;  %337 = vmatmul.f32.vlgmr.msra.gmra.mxu3 %v225_v17 }
  0x45   : > { %264 = vmatpush.msra.mxu0 %v233_v15  ;;  %573 = vmatpush.msra.mxu1 %v233_v15 }
  0x46   : > { %265 = vmatmul.f32.vlgmr.msra.gmra.mxu0 %v201_v18  ;;  %289 = vmatmul.f32.vlgmr.msra.gmra.mxu1 %v209_v19 }
  0x4c   : > { %316 = vmatmul.f32.gmra.mxu2 %v218_v20  ;;  %340 = vmatmul.f32.gmra.mxu3 %v226_v21 }
  0x4e   : > { %268 = vmatmul.f32.gmra.mxu0 %v202_v22  ;;  %292 = vmatmul.f32.gmra.mxu1 %v210_v23 }
  0x54   : > { %319 = vmatmul.f32.gmra.mxu2 %v219_v24  ;;  %343 = vmatmul.f32.gmra.mxu3 %v227_v25 }
  0x56   : > { %271 = vmatmul.f32.gmra.mxu0 %v203_v26  ;;  %295 = vmatmul.f32.gmra.mxu1 %v211_v27 }
  0x5c   : > { %322 = vmatmul.f32.gmra.mxu2 %v220_v28  ;;  %346 = vmatmul.f32.gmra.mxu3 %v228_v29 }
  0x5e   : > { %274 = vmatmul.f32.gmra.mxu0 %v204_v30  ;;  %298 = vmatmul.f32.gmra.mxu1 %v212_v31 }
  0x64   : > { %325 = vmatmul.f32.gmra.mxu2 %v221_v32  ;;  %349 = vmatmul.f32.gmra.mxu3 %v229_v33 }
  0x66   : > { %277 = vmatmul.f32.gmra.mxu0 %v205_v34  ;;  %301 = vmatmul.f32.gmra.mxu1 %v213_v35 }
  0x6c   : > { %328 = vmatmul.f32.gmra.mxu2 %v222_v36  ;;  %352 = vmatmul.f32.gmra.mxu3 %v230_v37 }
  0x6e   : > { %280 = vmatmul.f32.gmra.mxu0 %v206_v38  ;;  %304 = vmatmul.f32.gmra.mxu1 %v214_v39 }
  0x74   : > { %331 = vmatmul.f32.gmra.mxu2 %v223_v40  ;;  %355 = vmatmul.f32.gmra.mxu3 %v231_v41 }
  0x76   : > { %283 = vmatmul.f32.gmra.mxu0 %v207_v42  ;;  %307 = vmatmul.f32.gmra.mxu1 %v215_v43 }
  0x7c   : > { %334 = vmatmul.f32.gmra.mxu2 %v224_v44  ;;  %358 = vmatmul.f32.gmra.mxu3 %v232_v45 }
  0x7e   : > { %286 = vmatmul.f32.gmra.mxu0 %v208_v46  ;;  %310 = vmatmul.f32.gmra.mxu1 %v216_v47 }
  0xc3   : > { %v266_v48 = vpop.f32.mrf.mxu0  ;;  %v290_v49 = vpop.f32.mrf.mxu1 }
  0xc4   : > { %362 = vst [vmem:[%s975_s17] sm:$0xff] %v266_v48 }
  0xc5   : > { %370 = vst [vmem:[%s975_s17 + $0x40] sm:$0xff] %v290_v49 }
  0xc7   : > { %v314_v50 = vpop.f32.mrf.mxu2  ;;  %v338_v51 = vpop.f32.mrf.mxu3 }
  0xc8   : > { %378 = vst [vmem:[%s975_s17 + $0x80] sm:$0xff] %v314_v50 }
  0xc9   : > { %386 = vst [vmem:[%s975_s17 + $0xc0] sm:$0xff] %v338_v51 }
  0xcb   : > { %v269_v52 = vpop.f32.mrf.mxu0  ;;  %v293_v53 = vpop.f32.mrf.mxu1 }
  0xcc   : > { %363 = vst [vmem:[%s975_s17 + $0x8] sm:$0xff] %v269_v52 }
  0xcd   : > { %371 = vst [vmem:[%s975_s17 + $0x48] sm:$0xff] %v293_v53 }
  0xcf   : > { %v317_v54 = vpop.f32.mrf.mxu2  ;;  %v341_v55 = vpop.f32.mrf.mxu3 }
  0xd0   : > { %379 = vst [vmem:[%s975_s17 + $0x88] sm:$0xff] %v317_v54 }
  0xd1   : > { %387 = vst [vmem:[%s975_s17 + $0xc8] sm:$0xff] %v341_v55 }
  0xd3   : > { %v272_v56 = vpop.f32.mrf.mxu0  ;;  %v296_v57 = vpop.f32.mrf.mxu1 }
  0xd4   : > { %364 = vst [vmem:[%s975_s17 + $0x10] sm:$0xff] %v272_v56 }
  0xd5   : > { %372 = vst [vmem:[%s975_s17 + $0x50] sm:$0xff] %v296_v57 }
  0xd7   : > { %v320_v58 = vpop.f32.mrf.mxu2  ;;  %v344_v59 = vpop.f32.mrf.mxu3 }
  0xd8   : > { %380 = vst [vmem:[%s975_s17 + $0x90] sm:$0xff] %v320_v58 }
  0xd9   : > { %388 = vst [vmem:[%s975_s17 + $0xd0] sm:$0xff] %v344_v59 }
  0xdb   : > { %v275_v60 = vpop.f32.mrf.mxu0  ;;  %v299_v61 = vpop.f32.mrf.mxu1 }
  0xdc   : > { %365 = vst [vmem:[%s975_s17 + $0x18] sm:$0xff] %v275_v60 }
  0xdd   : > { %373 = vst [vmem:[%s975_s17 + $0x58] sm:$0xff] %v299_v61 }
  0xdf   : > { %v323_v62 = vpop.f32.mrf.mxu2  ;;  %v347_v63 = vpop.f32.mrf.mxu3 }
  0xe0   : > { %381 = vst [vmem:[%s975_s17 + $0x98] sm:$0xff] %v323_v62 }
  0xe1   : > { %389 = vst [vmem:[%s975_s17 + $0xd8] sm:$0xff] %v347_v63 }
  0xe3   : > { %v278_v0 = vpop.f32.mrf.mxu0  ;;  %v302_v1 = vpop.f32.mrf.mxu1 }
  0xe4   : > { %366 = vst [vmem:[%s975_s17 + $0x20] sm:$0xff] %v278_v0 }
  0xe5   : > { %374 = vst [vmem:[%s975_s17 + $0x60] sm:$0xff] %v302_v1 }
  0xe7   : > { %v326_v2 = vpop.f32.mrf.mxu2  ;;  %v350_v3 = vpop.f32.mrf.mxu3 }
  0xe8   : > { %382 = vst [vmem:[%s975_s17 + $0xa0] sm:$0xff] %v326_v2 }
  0xe9   : > { %390 = vst [vmem:[%s975_s17 + $0xe0] sm:$0xff] %v350_v3 }
  0xeb   : > { %v281_v4 = vpop.f32.mrf.mxu0  ;;  %v305_v5 = vpop.f32.mrf.mxu1 }
  0xec   : > { %367 = vst [vmem:[%s975_s17 + $0x28] sm:$0xff] %v281_v4 }
  0xed   : > { %375 = vst [vmem:[%s975_s17 + $0x68] sm:$0xff] %v305_v5 }
  0xef   : > { %v329_v6 = vpop.f32.mrf.mxu2  ;;  %v353_v7 = vpop.f32.mrf.mxu3 }
  0xf0   : > { %383 = vst [vmem:[%s975_s17 + $0xa8] sm:$0xff] %v329_v6 }
  0xf1   : > { %391 = vst [vmem:[%s975_s17 + $0xe8] sm:$0xff] %v353_v7 }
  0xf3   : > { %v284_v8 = vpop.f32.mrf.mxu0  ;;  %v308_v9 = vpop.f32.mrf.mxu1 }
  0xf4   : > { %368 = vst [vmem:[%s975_s17 + $0x30] sm:$0xff] %v284_v8 }
  0xf5   : > { %376 = vst [vmem:[%s975_s17 + $0x70] sm:$0xff] %v308_v9 }
  0xf7   : > { %v332_v10 = vpop.f32.mrf.mxu2  ;;  %v356_v11 = vpop.f32.mrf.mxu3 }
  0xf8   : > { %384 = vst [vmem:[%s975_s17 + $0xb0] sm:$0xff] %v332_v10 }
  0xf9   : > { %392 = vst [vmem:[%s975_s17 + $0xf0] sm:$0xff] %v356_v11 }
  0xfb   : > { %v287_v12 = vpop.f32.mrf.mxu0  ;;  %v311_v13 = vpop.f32.mrf.mxu1 }
  0xfc   : > { %369 = vst [vmem:[%s975_s17 + $0x38] sm:$0xff] %v287_v12 }
  0xfd   : > { %377 = vst [vmem:[%s975_s17 + $0x78] sm:$0xff] %v311_v13 }
  0xff   : > { %v335_v14 = vpop.f32.mrf.mxu2  ;;  %v359_v15 = vpop.f32.mrf.mxu3 }
 0x100   : > { %385 = vst [vmem:[%s975_s17 + $0xb8] sm:$0xff] %v335_v14 }
 0x101   : > { %393 = vst [vmem:[%s975_s17 + $0xf8] sm:$0xff] %v359_v15 }
 0x102   : > { %740 = shalt.err (!%p737_p12)
}
 0x103   : > { %s804_s30 = smov 128   ;;  %s805_s5 = smov 8  }
 0x104   : > { %582 = dma.vmem_to_hbm [thread:$0]  (%p902_p3), %s410_s6, 4096, %s412_s15, %s395_s12, %s804_s30, %s804_s30, %s805_s5  }
 0x105 PF: > { %p599_p13 = scmp.ge.s32.totalorder %s799_s14, 2  ;;  %s426_s7 = sand.u32 1, %s779_s9  }
 0x106   : > { %s427_s3 = scalar_lea.sflag [#allocation4], %s426_s7 }
 0x107   : > { %p593_p0 = pnand %p599_p13, %p870_p6 }
 0x109   : > { %p594_p5 = pneg %p593_p0 }
 0x10b   : > { %774 = dma.done.wait (%p594_p5), %s427_s3, 4096  }
 0x10c   : > { %776 = vsyncadd (%p594_p5), %s427_s3, 4294963200  ;;  %s19_s14 = sadd.s32 1, %s799_s14   ;;  %s1057_s9 = smov %s783_s10 }
 0x10d   : > { %p16_p7 = scmp.ge.s32.totalorder %s19_s14, 6   ;;  %s1058_s10 = smov %s787_s11 }
 0x10e   : > { %s1059_s11 = smov %s911_s8  ;;  %s1060_s12 = smov %s795_s13 }
 0x10f   : > { %s1061_s13 = smov %s1063_s29  ;;  %18 = sbr.rel (!%p16_p7) target bundleno = 7 (0x7), region = 77 }
 0x114   :  { %433 = vsyncpa [#allocation3], 1 }
 0x115   :  { %435 = vsyncpa [#allocation3 + $0x1], 1 }
 0x116   :  { %436 = vsyncpa [#allocation6], 1 }
 0x117   :  { %437 = vsyncpa [#allocation4], 1 }
 0x118   :  { %439 = vsyncpa [#allocation4 + $0x1], 1 }

</bundles_post_ra>
